<compile_context>
chip_gen: v6e
topology: v6e:2x2x1
jax: 0.10.0
libtpu: 0.0.40
codegen_flags: <defaults>
</compile_context>

<pallas_src>
import math

import jax
import jax.numpy as jnp
import numpy as np
from jax.experimental import pallas as pl
from jax.experimental.pallas import tpu as pltpu

EMB_DIMS = 256          # args.emb_dims
OUTPUT_CHANNELS = 4
OUT_PAD = 8             # narrow output width; real logits are [:, :4]
LEAKY_SLOPE = 0.2
BN_EPS = 1e-5
MAX_TB = 1024           # batch tile (rows of each branch per grid step)


def _leaky_relu(x):
    return jnp.where(x > 0, x, LEAKY_SLOPE * x)


def _round_up(x, m):
    return (x + m - 1) // m * m


# ---------------------------------------------------------------------------
# Kernel
# ---------------------------------------------------------------------------
def quadrant_kernel(x1_ref, x2_ref,
                    w1_ref, b1_ref,
                    w2_ref, b2_ref,
                    w3_ref, b3_ref,
                    fcw1_ref, fcw2_ref, fcb_ref,
                    out_ref):
    """Fused siamese forward for one batch tile.

    x1_ref, x2_ref : (TB, 128) f32 (cast to bf16 in-kernel)
    wN_ref         : bf16 conv weights with BN scale pre-folded
    bN_ref         : (1, C) f32 BN shifts
    fcwN_ref       : (EMB, OUT_PAD) bf16 (zero-padded beyond column 4)
    out_ref        : (TB, OUT_PAD) f32
    """
    tb = x1_ref.shape[0]
    # Shared weights -> stack the two branch tiles and run the chain once.
    # bf16 cast happens here on the VPU (it has large slack at these shapes).
    x = jnp.concatenate([x1_ref[...], x2_ref[...]], axis=0).astype(jnp.bfloat16)

    h = jnp.dot(x, w1_ref[...], preferred_element_type=jnp.float32)
    h = _leaky_relu(h + b1_ref[...])
    h = jnp.dot(h.astype(jnp.bfloat16), w2_ref[...],
                preferred_element_type=jnp.float32)
    h = _leaky_relu(h + b2_ref[...])
    h = jnp.dot(h.astype(jnp.bfloat16), w3_ref[...],
                preferred_element_type=jnp.float32)
    f = _leaky_relu(h + b3_ref[...]).astype(jnp.bfloat16)          # (2TB, EMB)

    # TODO(synk): nn.Dropout is implemented as inference-mode identity here.
    # cat((f1, f2), dim=1) @ W_fc.T  ==  f1 @ Wfc1 + f2 @ Wfc2
    f1 = f[:tb]
    f2 = f[tb:]
    out_ref[...] = (jnp.dot(f1, fcw1_ref[...], preferred_element_type=jnp.float32)
                    + jnp.dot(f2, fcw2_ref[...], preferred_element_type=jnp.float32)
                    + fcb_ref[...])


# ---------------------------------------------------------------------------
# Wrapper
# ---------------------------------------------------------------------------
def _const_spec(a):
    nd = a.ndim
    return pl.BlockSpec(a.shape, lambda i, _nd=nd: (0,) * _nd)


def _choose_tile(B):
    if B <= 16:
        return B                       # one full-array block (tiny batches)
    # Aim for >=2 grid steps so v7x's two TensorCores both get work; keep the
    # tile a multiple of 16 (sublane-aligned for f32 and packed bf16).
    return min(MAX_TB, _round_up(-(-B // 2), 16))


def quadrant_net_forward(input1, input2, kparams):
    """input1, input2: (B, 128, 1) or (B, 128) float32 (Conv1d NCL, L == 1)."""
    if input1.ndim == 3:
        input1 = input1[:, :, 0]
        input2 = input2[:, :, 0]
    B = input1.shape[0]
    TB = _choose_tile(B)
    n_steps = -(-B // TB)

    weight_args = (kparams["w1"], kparams["b1"],
                   kparams["w2"], kparams["b2"],
                   kparams["w3"], kparams["b3"],
                   kparams["fcw1"], kparams["fcw2"], kparams["fcb"])

    x_spec = pl.BlockSpec((TB, 128), lambda i: (i, 0))
    out_spec = pl.BlockSpec((TB, OUT_PAD), lambda i: (i, 0))

    flops = (2 * (2 * B) * (128 * 64 + 64 * 128 + 128 * EMB_DIMS)
             + 2 * (2 * B) * EMB_DIMS * OUT_PAD)
    weight_bytes = 2 * (128 * 64 + 64 * 128 + 128 * EMB_DIMS
                        + 2 * EMB_DIMS * OUT_PAD)
    bias_bytes = 4 * (64 + 128 + EMB_DIMS + OUT_PAD)
    bytes_accessed = (2 * B * 128 * 4              # f32 inputs
                      + weight_bytes + bias_bytes
                      + B * OUT_PAD * 4)           # narrow f32 output
    cost = pl.CostEstimate(flops=flops, transcendentals=0,
                           bytes_accessed=bytes_accessed)

    out = pl.pallas_call(
        quadrant_kernel,
        out_shape=jax.ShapeDtypeStruct((B, OUT_PAD), jnp.float32),
        grid=(n_steps,),
        in_specs=[x_spec, x_spec] + [_const_spec(a) for a in weight_args],
        out_specs=out_spec,
        compiler_params=pltpu.CompilerParams(
            dimension_semantics=("parallel",),
            vmem_limit_bytes=48 * 1024 * 1024),
        cost_estimate=cost,
    )(input1.astype(jnp.float32), input2.astype(jnp.float32), *weight_args)

    return out[:, :OUTPUT_CHANNELS]


# ---------------------------------------------------------------------------
# Parameters
# ---------------------------------------------------------------------------
def init_params(key):
    """Model parameters in f32, PyTorch-equivalent layout (inference mode)."""
    ks = jax.random.split(key, 20)

    def conv_w(k, cin, cout):
        # PyTorch Conv1d weight is (cout, cin, 1); store transposed (cin, cout).
        bound = 1.0 / math.sqrt(cin)
        return jax.random.uniform(k, (cin, cout), jnp.float32, -bound, bound)

    def bn_fold(kg, kb, km, kv, c):
        gamma = 1.0 + 0.1 * jax.random.normal(kg, (c,), jnp.float32)
        beta = 0.1 * jax.random.normal(kb, (c,), jnp.float32)
        running_mean = 0.1 * jax.random.normal(km, (c,), jnp.float32)
        running_var = 0.9 + 0.1 * jnp.abs(jax.random.normal(kv, (c,), jnp.float32))
        scale = gamma / jnp.sqrt(running_var + BN_EPS)
        shift = beta - running_mean * scale
        return scale.reshape(1, c), shift.reshape(1, c)

    p = {}
    p["w1"] = conv_w(ks[0], 128, 64)
    p["s1"], p["b1"] = bn_fold(ks[1], ks[2], ks[3], ks[4], 64)
    p["w2"] = conv_w(ks[5], 64, 128)
    p["s2"], p["b2"] = bn_fold(ks[6], ks[7], ks[8], ks[9], 128)
    p["w3"] = conv_w(ks[10], 128, EMB_DIMS)
    p["s3"], p["b3"] = bn_fold(ks[11], ks[12], ks[13], ks[14], EMB_DIMS)

    # fc1: Linear(2*EMB_DIMS, 4); weight (4, 2*EMB) stored transposed + split.
    bound = 1.0 / math.sqrt(2 * EMB_DIMS)
    fcw = jax.random.uniform(ks[15], (2 * EMB_DIMS, OUTPUT_CHANNELS),
                             jnp.float32, -bound, bound)
    p["fcw1"] = fcw[:EMB_DIMS]
    p["fcw2"] = fcw[EMB_DIMS:]
    p["fcb"] = jax.random.uniform(ks[16], (1, OUTPUT_CHANNELS),
                                  jnp.float32, -bound, bound)
    return p


def fold_params(p):
    """One-time transform: fold BN scale into conv weights (bf16); pad fc to
    OUT_PAD output lanes; keep BN shifts / fc bias in f32."""
    kp = {}
    kp["w1"] = (p["w1"] * p["s1"]).astype(jnp.bfloat16)
    kp["b1"] = p["b1"]
    kp["w2"] = (p["w2"] * p["s2"]).astype(jnp.bfloat16)
    kp["b2"] = p["b2"]
    kp["w3"] = (p["w3"] * p["s3"]).astype(jnp.bfloat16)
    kp["b3"] = p["b3"]

    fcw1 = jnp.zeros((EMB_DIMS, OUT_PAD), jnp.float32)
    fcw1 = fcw1.at[:, :OUTPUT_CHANNELS].set(p["fcw1"])
    fcw2 = jnp.zeros((EMB_DIMS, OUT_PAD), jnp.float32)
    fcw2 = fcw2.at[:, :OUTPUT_CHANNELS].set(p["fcw2"])
    fcb = jnp.zeros((1, OUT_PAD), jnp.float32)
    fcb = fcb.at[:, :OUTPUT_CHANNELS].set(p["fcb"])
    kp["fcw1"] = fcw1.astype(jnp.bfloat16)
    kp["fcw2"] = fcw2.astype(jnp.bfloat16)
    kp["fcb"] = fcb
    return kp


# ---------------------------------------------------------------------------
# Pure-JAX reference (f32, inference mode) for correctness check
# ---------------------------------------------------------------------------
def reference_forward(input1, input2, p):
    def branch(x):
        h = _leaky_relu(x @ p["w1"] * p["s1"] + p["b1"])
        h = _leaky_relu(h @ p["w2"] * p["s2"] + p["b2"])
        h = _leaky_relu(h @ p["w3"] * p["s3"] + p["b3"])
        return h
    f1 = branch(input1[:, :, 0])
    f2 = branch(input2[:, :, 0])
    return f1 @ p["fcw1"] + f2 @ p["fcw2"] + p["fcb"]


if __name__ == "__main__":
    key = jax.random.PRNGKey(0)
    k_in1, k_in2, k_in3, k_in4, k_params = jax.random.split(key, 5)

    params = init_params(k_params)
    kparams = fold_params(params)          # one-time parameter transform

    # PyTorch forward requires sequence length 1 (because of .squeeze(2)).
    B = 2
    input1 = jax.random.normal(k_in1, (B, 128, 1), jnp.float32)
    input2 = jax.random.normal(k_in2, (B, 128, 1), jnp.float32)

    out = quadrant_net_forward(input1, input2, kparams)
    out = jax.block_until_ready(out)
    ref = reference_forward(input1, input2, params)
    # bf16 matmul operands (f32 accumulate) vs f32 reference -> loose tolerance.
    np.testing.assert_allclose(np.asarray(out), np.asarray(ref),
                               rtol=5e-2, atol=5e-2)

    # Second check: multi-step grid with a partial final block (no batch pad).
    B2 = 37
    in1b = jax.random.normal(k_in3, (B2, 128, 1), jnp.float32)
    in2b = jax.random.normal(k_in4, (B2, 128, 1), jnp.float32)
    out2 = jax.block_until_ready(quadrant_net_forward(in1b, in2b, kparams))
    ref2 = reference_forward(in1b, in2b, params)
    np.testing.assert_allclose(np.asarray(out2), np.asarray(ref2),
                               rtol=5e-2, atol=5e-2)

    print("KERNEL_OK")
</pallas_src>

<mosaic_0001>
module attributes {stable_mosaic.version = 11 : i64} {
  func.func @quadrant_kernel(%arg0: i32, %arg1: memref<2x128xf32, #tpu.memory_space<vmem>>, %arg2: memref<2x128xf32, #tpu.memory_space<vmem>>, %arg3: memref<128x64xbf16, #tpu.memory_space<vmem>>, %arg4: memref<1x64xf32, #tpu.memory_space<vmem>>, %arg5: memref<64x128xbf16, #tpu.memory_space<vmem>>, %arg6: memref<1x128xf32, #tpu.memory_space<vmem>>, %arg7: memref<128x256xbf16, #tpu.memory_space<vmem>>, %arg8: memref<1x256xf32, #tpu.memory_space<vmem>>, %arg9: memref<256x8xbf16, #tpu.memory_space<vmem>>, %arg10: memref<256x8xbf16, #tpu.memory_space<vmem>>, %arg11: memref<1x8xf32, #tpu.memory_space<vmem>>, %arg12: memref<2x8xf32, #tpu.memory_space<vmem>>) attributes {dimension_semantics = [#tpu.dimension_semantics<parallel>], iteration_bounds = array<i64: 1>, scalar_prefetch = 0 : i64, scratch_operands = 0 : i64, tpu.core_type = #tpu.core_type<tc>, window_params = [{transform_indices = @transform_0, window_bounds = array<i64: 2, 128>}, {transform_indices = @transform_1, window_bounds = array<i64: 2, 128>}, {pipeline_mode = #tpu.pipeline_mode<synchronous>, transform_indices = @transform_2, window_bounds = array<i64: 128, 64>}, {pipeline_mode = #tpu.pipeline_mode<synchronous>, transform_indices = @transform_3, window_bounds = array<i64: 1, 64>}, {pipeline_mode = #tpu.pipeline_mode<synchronous>, transform_indices = @transform_4, window_bounds = array<i64: 64, 128>}, {pipeline_mode = #tpu.pipeline_mode<synchronous>, transform_indices = @transform_5, window_bounds = array<i64: 1, 128>}, {pipeline_mode = #tpu.pipeline_mode<synchronous>, transform_indices = @transform_6, window_bounds = array<i64: 128, 256>}, {pipeline_mode = #tpu.pipeline_mode<synchronous>, transform_indices = @transform_7, window_bounds = array<i64: 1, 256>}, {pipeline_mode = #tpu.pipeline_mode<synchronous>, transform_indices = @transform_8, window_bounds = array<i64: 256, 8>}, {pipeline_mode = #tpu.pipeline_mode<synchronous>, transform_indices = @transform_9, window_bounds = array<i64: 256, 8>}, {pipeline_mode = #tpu.pipeline_mode<synchronous>, transform_indices = @transform_10, window_bounds = array<i64: 1, 8>}, {transform_indices = @transform_11, window_bounds = array<i64: 2, 8>}]} {
    %c0 = arith.constant 0 : index
    %c0_0 = arith.constant 0 : index
    %0 = vector.load %arg1[%c0, %c0_0] : memref<2x128xf32, #tpu.memory_space<vmem>>, vector<2x128xf32>
    %c0_1 = arith.constant 0 : index
    %c0_2 = arith.constant 0 : index
    %1 = vector.load %arg2[%c0_1, %c0_2] : memref<2x128xf32, #tpu.memory_space<vmem>>, vector<2x128xf32>
    %2 = tpu.concatenate %0, %1 in 0 : vector<2x128xf32>, vector<2x128xf32> -> vector<4x128xf32>
    %3 = arith.truncf %2 : vector<4x128xf32> to vector<4x128xbf16>
    %c0_3 = arith.constant 0 : index
    %c0_4 = arith.constant 0 : index
    %4 = vector.load %arg3[%c0_3, %c0_4] : memref<128x64xbf16, #tpu.memory_space<vmem>>, vector<128x64xbf16>
    %cst = arith.constant dense<0.000000e+00> : vector<4x64xf32>
    %5 = tpu.matmul %3, %4, %cst {dimension_numbers = #tpu.dot_dimension_numbers<[1], [0], [0], [1], [0, 0, 1, 1], [], []>} : vector<4x128xbf16>, vector<128x64xbf16>, vector<4x64xf32> -> vector<4x64xf32>
    %c0_5 = arith.constant 0 : index
    %c0_6 = arith.constant 0 : index
    %6 = vector.load %arg4[%c0_5, %c0_6] : memref<1x64xf32, #tpu.memory_space<vmem>>, vector<1x64xf32>
    %7 = vector.broadcast %6 : vector<1x64xf32> to vector<4x64xf32>
    %8 = arith.addf %5, %7 : vector<4x64xf32>
    %cst_7 = arith.constant 0.000000e+00 : f32
    %9 = vector.broadcast %cst_7 : f32 to vector<4x64xf32>
    %10 = arith.cmpf ogt, %8, %9 : vector<4x64xf32>
    %cst_8 = arith.constant 2.000000e-01 : f32
    %11 = vector.broadcast %cst_8 : f32 to vector<4x64xf32>
    %12 = arith.mulf %11, %8 : vector<4x64xf32>
    %13 = arith.select %10, %8, %12 : vector<4x64xi1>, vector<4x64xf32>
    %14 = arith.truncf %13 : vector<4x64xf32> to vector<4x64xbf16>
    %c0_9 = arith.constant 0 : index
    %c0_10 = arith.constant 0 : index
    %15 = vector.load %arg5[%c0_9, %c0_10] : memref<64x128xbf16, #tpu.memory_space<vmem>>, vector<64x128xbf16>
    %cst_11 = arith.constant dense<0.000000e+00> : vector<4x128xf32>
    %16 = tpu.matmul %14, %15, %cst_11 {dimension_numbers = #tpu.dot_dimension_numbers<[1], [0], [0], [1], [0, 0, 1, 1], [], []>} : vector<4x64xbf16>, vector<64x128xbf16>, vector<4x128xf32> -> vector<4x128xf32>
    %c0_12 = arith.constant 0 : index
    %c0_13 = arith.constant 0 : index
    %17 = vector.load %arg6[%c0_12, %c0_13] : memref<1x128xf32, #tpu.memory_space<vmem>>, vector<1x128xf32>
    %18 = vector.broadcast %17 : vector<1x128xf32> to vector<4x128xf32>
    %19 = arith.addf %16, %18 : vector<4x128xf32>
    %cst_14 = arith.constant 0.000000e+00 : f32
    %20 = vector.broadcast %cst_14 : f32 to vector<4x128xf32>
    %21 = arith.cmpf ogt, %19, %20 : vector<4x128xf32>
    %cst_15 = arith.constant 2.000000e-01 : f32
    %22 = vector.broadcast %cst_15 : f32 to vector<4x128xf32>
    %23 = arith.mulf %22, %19 : vector<4x128xf32>
    %24 = arith.select %21, %19, %23 : vector<4x128xi1>, vector<4x128xf32>
    %25 = arith.truncf %24 : vector<4x128xf32> to vector<4x128xbf16>
    %c0_16 = arith.constant 0 : index
    %c0_17 = arith.constant 0 : index
    %26 = vector.load %arg7[%c0_16, %c0_17] : memref<128x256xbf16, #tpu.memory_space<vmem>>, vector<128x256xbf16>
    %cst_18 = arith.constant dense<0.000000e+00> : vector<4x256xf32>
    %27 = tpu.matmul %25, %26, %cst_18 {dimension_numbers = #tpu.dot_dimension_numbers<[1], [0], [0], [1], [0, 0, 1, 1], [], []>} : vector<4x128xbf16>, vector<128x256xbf16>, vector<4x256xf32> -> vector<4x256xf32>
    %c0_19 = arith.constant 0 : index
    %c0_20 = arith.constant 0 : index
    %28 = vector.load %arg8[%c0_19, %c0_20] : memref<1x256xf32, #tpu.memory_space<vmem>>, vector<1x256xf32>
    %29 = vector.broadcast %28 : vector<1x256xf32> to vector<4x256xf32>
    %30 = arith.addf %27, %29 : vector<4x256xf32>
    %cst_21 = arith.constant 0.000000e+00 : f32
    %31 = vector.broadcast %cst_21 : f32 to vector<4x256xf32>
    %32 = arith.cmpf ogt, %30, %31 : vector<4x256xf32>
    %cst_22 = arith.constant 2.000000e-01 : f32
    %33 = vector.broadcast %cst_22 : f32 to vector<4x256xf32>
    %34 = arith.mulf %33, %30 : vector<4x256xf32>
    %35 = arith.select %32, %30, %34 : vector<4x256xi1>, vector<4x256xf32>
    %36 = arith.truncf %35 : vector<4x256xf32> to vector<4x256xbf16>
    %37 = vector.extract_strided_slice %36 {offsets = [0, 0], sizes = [2, 256], strides = [1, 1]} : vector<4x256xbf16> to vector<2x256xbf16>
    %38 = vector.extract_strided_slice %36 {offsets = [2, 0], sizes = [2, 256], strides = [1, 1]} : vector<4x256xbf16> to vector<2x256xbf16>
    %c0_23 = arith.constant 0 : index
    %c0_24 = arith.constant 0 : index
    %39 = vector.load %arg9[%c0_23, %c0_24] : memref<256x8xbf16, #tpu.memory_space<vmem>>, vector<256x8xbf16>
    %cst_25 = arith.constant dense<0.000000e+00> : vector<2x8xf32>
    %40 = tpu.matmul %37, %39, %cst_25 {dimension_numbers = #tpu.dot_dimension_numbers<[1], [0], [0], [1], [0, 0, 1, 1], [], []>} : vector<2x256xbf16>, vector<256x8xbf16>, vector<2x8xf32> -> vector<2x8xf32>
    %c0_26 = arith.constant 0 : index
    %c0_27 = arith.constant 0 : index
    %41 = vector.load %arg10[%c0_26, %c0_27] : memref<256x8xbf16, #tpu.memory_space<vmem>>, vector<256x8xbf16>
    %cst_28 = arith.constant dense<0.000000e+00> : vector<2x8xf32>
    %42 = tpu.matmul %38, %41, %cst_28 {dimension_numbers = #tpu.dot_dimension_numbers<[1], [0], [0], [1], [0, 0, 1, 1], [], []>} : vector<2x256xbf16>, vector<256x8xbf16>, vector<2x8xf32> -> vector<2x8xf32>
    %43 = arith.addf %40, %42 : vector<2x8xf32>
    %c0_29 = arith.constant 0 : index
    %c0_30 = arith.constant 0 : index
    %44 = vector.load %arg11[%c0_29, %c0_30] : memref<1x8xf32, #tpu.memory_space<vmem>>, vector<1x8xf32>
    %45 = vector.broadcast %44 : vector<1x8xf32> to vector<2x8xf32>
    %46 = arith.addf %43, %45 : vector<2x8xf32>
    %c0_31 = arith.constant 0 : index
    %c0_32 = arith.constant 0 : index
    %47 = vector.load %arg12[%c0_31, %c0_32] : memref<2x8xf32, #tpu.memory_space<vmem>>, vector<2x8xf32>
    tpu.vector_store %arg12[%c0_31, %c0_32], %46 {strides = array<i32>} : memref<2x8xf32, #tpu.memory_space<vmem>>, vector<2x8xf32>,
    return
  }
  func.func @transform_0(%arg0: i32) -> (i32, i32) {
    %c0_i32 = arith.constant 0 : i32
    %c0_i32_0 = arith.constant 0 : i32
    return %arg0, %c0_i32 : i32, i32
  }
  func.func @transform_1(%arg0: i32) -> (i32, i32) {
    %c0_i32 = arith.constant 0 : i32
    %c0_i32_0 = arith.constant 0 : i32
    return %arg0, %c0_i32 : i32, i32
  }
  func.func @transform_2(%arg0: i32) -> (i32, i32) {
    %c0_i32 = arith.constant 0 : i32
    %c0_i32_0 = arith.constant 0 : i32
    %c0_i32_1 = arith.constant 0 : i32
    return %c0_i32, %c0_i32_0 : i32, i32
  }
  func.func @transform_3(%arg0: i32) -> (i32, i32) {
    %c0_i32 = arith.constant 0 : i32
    %c0_i32_0 = arith.constant 0 : i32
    %c0_i32_1 = arith.constant 0 : i32
    return %c0_i32, %c0_i32_0 : i32, i32
  }
  func.func @transform_4(%arg0: i32) -> (i32, i32) {
    %c0_i32 = arith.constant 0 : i32
    %c0_i32_0 = arith.constant 0 : i32
    %c0_i32_1 = arith.constant 0 : i32
    return %c0_i32, %c0_i32_0 : i32, i32
  }
  func.func @transform_5(%arg0: i32) -> (i32, i32) {
    %c0_i32 = arith.constant 0 : i32
    %c0_i32_0 = arith.constant 0 : i32
    %c0_i32_1 = arith.constant 0 : i32
    return %c0_i32, %c0_i32_0 : i32, i32
  }
  func.func @transform_6(%arg0: i32) -> (i32, i32) {
    %c0_i32 = arith.constant 0 : i32
    %c0_i32_0 = arith.constant 0 : i32
    %c0_i32_1 = arith.constant 0 : i32
    return %c0_i32, %c0_i32_0 : i32, i32
  }
  func.func @transform_7(%arg0: i32) -> (i32, i32) {
    %c0_i32 = arith.constant 0 : i32
    %c0_i32_0 = arith.constant 0 : i32
    %c0_i32_1 = arith.constant 0 : i32
    return %c0_i32, %c0_i32_0 : i32, i32
  }
  func.func @transform_8(%arg0: i32) -> (i32, i32) {
    %c0_i32 = arith.constant 0 : i32
    %c0_i32_0 = arith.constant 0 : i32
    %c0_i32_1 = arith.constant 0 : i32
    return %c0_i32, %c0_i32_0 : i32, i32
  }
  func.func @transform_9(%arg0: i32) -> (i32, i32) {
    %c0_i32 = arith.constant 0 : i32
    %c0_i32_0 = arith.constant 0 : i32
    %c0_i32_1 = arith.constant 0 : i32
    return %c0_i32, %c0_i32_0 : i32, i32
  }
  func.func @transform_10(%arg0: i32) -> (i32, i32) {
    %c0_i32 = arith.constant 0 : i32
    %c0_i32_0 = arith.constant 0 : i32
    %c0_i32_1 = arith.constant 0 : i32
    return %c0_i32, %c0_i32_0 : i32, i32
  }
  func.func @transform_11(%arg0: i32) -> (i32, i32) {
    %c0_i32 = arith.constant 0 : i32
    %c0_i32_0 = arith.constant 0 : i32
    return %arg0, %c0_i32 : i32, i32
  }
}

</mosaic_0001>

<bundles_post_ra>
// kernel: tpu_custom_call.1
= control target key start
LH: loop header
LB: loop body
LE: loop exit
PB: predicated region body
PF: predicated region fallthrough
CT: control target
= control target key end

     0   :  { %v1021_v1 = vmov 0.0   ;;  %vm1022_vm0 = vmmov 0   ;;  %vm45_vm1 = vcmask 1041408   ;;  %s1286_s0 = inlined_call_operand.vmem [shape: f32[2,128], index: 0, kind: input, shape index: {}]   ;;  %s1287_s1 = inlined_call_operand.vmem [shape: f32[2,128], index: 1, kind: input, shape index: {}]   ;;  %s1288_s2 = inlined_call_operand.vmem [shape: bf16[128,64], index: 2, kind: input, shape index: {}]   ;;  %s1289_s3 = inlined_call_operand.vmem [shape: f32[1,64], index: 3, kind: input, shape index: {}]   ;;  %s1290_s4 = inlined_call_operand.vmem [shape: bf16[64,128], index: 4, kind: input, shape index: {}]   ;;  %s1291_s5 = inlined_call_operand.vmem [shape: f32[1,128], index: 5, kind: input, shape index: {}]   ;;  %s1292_s6 = inlined_call_operand.vmem [shape: bf16[128,256], index: 6, kind: input, shape index: {}]   ;;  %s1293_s7 = inlined_call_operand.vmem [shape: f32[1,256], index: 7, kind: input, shape index: {}]   ;;  %s1294_s8 = inlined_call_operand.vmem [shape: bf16[256,8], index: 8, kind: input, shape index: {}]   ;;  %s1295_s9 = inlined_call_operand.vmem [shape: bf16[256,8], index: 9, kind: input, shape index: {}]   ;;  %s1296_s10 = inlined_call_operand.vmem [shape: f32[1,8], index: 10, kind: input, shape index: {}]   ;;  %s1297_s11 = inlined_call_operand.hbm [shape: f32[2,8], index: 11, kind: output, shape index: {}]  }
   0x1   :  { %v931_v0 = vld [vmem:[%s1288_s2 + $0x38] sm:$0xff]   ;;  %895 = vmatprep.subr.bf16.mxu0 %v1021_v1  ;;  %915 = vmatprep.subr.bf16.mxu1 %v1021_v1  ;;  %v932_v2 = vld [vmem:[%s1288_s2 + $0x30] sm:$0xff]   ;;  %v933_v3 = vld [vmem:[%s1288_s2 + $0x28] sm:$0xff]  }
   0x2   :  { %896 = vmatpush3.bf16.msra.mxu0 %v931_v0  ;;  %911 = vmatprep.mubr.msk.bf16.mxu0 %vm1022_vm0, %v1021_v1  ;;  %v939_v4 = vld [vmem:[%s1290_s4 + $0x18] sm:$0xff]   ;;  %v934_v5 = vld [vmem:[%s1288_s2 + $0x20] sm:$0xff]   ;;  %v940_v6 = vld [vmem:[%s1290_s4 + $0x10] sm:$0xff]  }
   0x3   :  { %897 = vmatprep.subr.bf16.mxu0 %v1021_v1  ;;  %923 = vmatprep.mubr.msk.bf16.mxu1 %vm1022_vm0, %v1021_v1  ;;  %v935_v7 = vld [vmem:[%s1288_s2 + $0x18] sm:$0xff]   ;;  %v41_v8 = vld [vmem:[%s1287_s1] sm:$0x3]  ;;  %v936_v9 = vld [vmem:[%s1288_s2 + $0x10] sm:$0xff]  }
   0x4   :  { %916 = vmatpush3.bf16.msra.mxu1 %v939_v4  ;;  %v43_v10 = vrot.slane %v41_v8, 6  ;;  %v937_v11 = vld [vmem:[%s1288_s2 + $0x8] sm:$0xff]   ;;  %v40_v12 = vld [vmem:[%s1286_s0] sm:$0x3] }
   0x5   :  { %917 = vmatprep.subr.bf16.mxu1 %v1021_v1  ;;  %v938_v13 = vld [vmem:[%s1288_s2] sm:$0xff]  }
   0x6   :  { %898 = vmatpush3.bf16.msra.mxu0 %v932_v2  ;;  %v46_v14 = vsel %vm45_vm1, %v40_v12, %v43_v10 }
   0x7   :  { %899 = vmatprep.subr.bf16.mxu0 %v1021_v1  ;;  %v47_v15 = vpack.c.bf16 %v46_v14, %v46_v14 }
   0x8   :  { %918 = vmatpush3.bf16.msra.mxu1 %v940_v6 }
   0x9   :  { %919 = vmatprep.subr.bf16.mxu1 %v1021_v1 }
   0xa   :  { %900 = vmatpush3.bf16.msra.mxu0 %v933_v3 }
   0xb   :  { %901 = vmatprep.subr.bf16.mxu0 %v1021_v1 }
   0xe   :  { %902 = vmatpush3.bf16.msra.mxu0 %v934_v5 }
   0xf   :  { %903 = vmatprep.subr.bf16.mxu0 %v1021_v1 }
  0x12   :  { %904 = vmatpush3.bf16.msra.mxu0 %v935_v7 }
  0x13   :  { %905 = vmatprep.subr.bf16.mxu0 %v1021_v1 }
  0x16   :  { %906 = vmatpush3.bf16.msra.mxu0 %v936_v9 }
  0x17   :  { %907 = vmatprep.subr.bf16.mxu0 %v1021_v1 }
  0x1a   :  { %908 = vmatpush3.bf16.msra.mxu0 %v937_v11 }
  0x1b   :  { %909 = vmatprep.subr.bf16.mxu0 %v1021_v1 }
  0x1e   :  { %910 = vmatpush3.bf16.msra.mxu0 %v938_v13 }
  0x21   :  { %912 = vmatmul.mubr.bf16.vlgmr.msra.gmra.mxu0 %v47_v15 }
  0x22   :  { %16 = vsyncpa [#allocation3], 0  ;;  %v941_v16 = vld [vmem:[%s1290_s4 + $0x8] sm:$0xff]   ;;  %v942_v17 = vld [vmem:[%s1290_s4] sm:$0xff]   ;;  %vm202_vm3 = vcmask 523264   ;;  %v1023_v43 = vmov 0  }
  0x23   :  { %920 = vmatpush3.bf16.msra.mxu1 %v941_v16  ;;  %v945_v18 = vld [vmem:[%s1292_s6 + $0x74] ss:$8 sps:$4 sm:$0xff]   ;;  %v773_v19 = vld [vmem:[%s1289_s3] ss:$0 sm:$0xff]  ;;  %v943_v26 = vld [vmem:[%s1292_s6 + $0x70] ss:$8 sps:$4 sm:$0xff]  }
  0x24   :  { %921 = vmatprep.subr.bf16.mxu1 %v1021_v1  ;;  %v948_v29 = vld [vmem:[%s1292_s6 + $0x64] ss:$8 sps:$4 sm:$0xff]   ;;  %v946_v30 = vld [vmem:[%s1292_s6 + $0x60] ss:$8 sps:$4 sm:$0xff]   ;;  %v951_v31 = vld [vmem:[%s1292_s6 + $0x54] ss:$8 sps:$4 sm:$0xff]  }
  0x25   :  { %v949_v32 = vld [vmem:[%s1292_s6 + $0x50] ss:$8 sps:$4 sm:$0xff]   ;;  %v954_v33 = vld [vmem:[%s1292_s6 + $0x44] ss:$8 sps:$4 sm:$0xff]   ;;  %v952_v34 = vld [vmem:[%s1292_s6 + $0x40] ss:$8 sps:$4 sm:$0xff]  }
  0x26   :  { %v957_v35 = vld [vmem:[%s1292_s6 + $0x34] ss:$8 sps:$4 sm:$0xff]   ;;  %v955_v36 = vld [vmem:[%s1292_s6 + $0x30] ss:$8 sps:$4 sm:$0xff]   ;;  %v960_v37 = vld [vmem:[%s1292_s6 + $0x24] ss:$8 sps:$4 sm:$0xff]  }
  0x27   :  { %922 = vmatpush3.bf16.msra.mxu1 %v942_v17  ;;  %v958_v38 = vld [vmem:[%s1292_s6 + $0x20] ss:$8 sps:$4 sm:$0xff]   ;;  %v963_v39 = vld [vmem:[%s1292_s6 + $0x14] ss:$8 sps:$4 sm:$0xff]   ;;  %v961_v40 = vld [vmem:[%s1292_s6 + $0x10] ss:$8 sps:$4 sm:$0xff]  }
  0x28   :  { %358 = vmatprep.subr.bf16.mxu1 %v945_v18  ;;  %v966_v41 = vld [vmem:[%s1292_s6 + $0x4] ss:$8 sps:$4 sm:$0xff]   ;;  %v964_v42 = vld [vmem:[%s1292_s6] ss:$8 sps:$4 sm:$0xff]   ;;  %v967_v44 = vld [vmem:[%s1294_s8 + $0x78] sm:$0xff]   ;;  %vm757_vm7 = vcmask 58368  }
  0x29   :  { %v969_v45 = vld [vmem:[%s1295_s9 + $0x78] sm:$0xff]   ;;  %v973_v47 = vld [vmem:[%s1295_s9 + $0x70] sm:$0xff]   ;;  %v977_v49 = vld [vmem:[%s1295_s9 + $0x68] sm:$0xff]  }
  0x2a   :  { %v970_v46 = vld [vmem:[%s1295_s9 + $0x38] sm:$0xff]   ;;  %851 = vmatprep.subr.bf16.mxu0 %v969_v45  ;;  %v974_v48 = vld [vmem:[%s1295_s9 + $0x30] sm:$0xff]   ;;  %v978_v50 = vld [vmem:[%s1295_s9 + $0x28] sm:$0xff]  }
  0x2b   :  { %852 = vmatpush3.bf16.msra.mxu0 %v970_v46  ;;  %v981_v51 = vld [vmem:[%s1295_s9 + $0x60] sm:$0xff]   ;;  %v985_v53 = vld [vmem:[%s1295_s9 + $0x58] sm:$0xff]   ;;  %v971_v1 = vld [vmem:[%s1294_s8 + $0x70] sm:$0xff]  }
  0x2c   :  { %853 = vmatprep.subr.bf16.mxu0 %v973_v47  ;;  %v982_v52 = vld [vmem:[%s1295_s9 + $0x20] sm:$0xff]   ;;  %v986_v54 = vld [vmem:[%s1295_s9 + $0x18] sm:$0xff]   ;;  %v972_v2 = vld [vmem:[%s1294_s8 + $0x30] sm:$0xff]  }
  0x2d   :  { %v782_v55 = vld [vmem:[%s1291_s5] ss:$0 sm:$0xff]  ;;  %v968_v62 = vld [vmem:[%s1294_s8 + $0x38] sm:$0xff]   ;;  %v975_v3 = vld [vmem:[%s1294_s8 + $0x68] sm:$0xff]  }
  0x2e   :  { %v976_v4 = vld [vmem:[%s1294_s8 + $0x28] sm:$0xff]   ;;  %v979_v5 = vld [vmem:[%s1294_s8 + $0x60] sm:$0xff]   ;;  %v983_v7 = vld [vmem:[%s1294_s8 + $0x58] sm:$0xff]  }
  0x2f   :  { %854 = vmatpush3.bf16.msra.mxu0 %v974_v48  ;;  %v980_v6 = vld [vmem:[%s1294_s8 + $0x20] sm:$0xff]   ;;  %v984_v8 = vld [vmem:[%s1294_s8 + $0x18] sm:$0xff]   ;;  %v987_v9 = vld [vmem:[%s1294_s8 + $0x50] sm:$0xff]  }
  0x30   :  { %855 = vmatprep.subr.bf16.mxu0 %v977_v49  ;;  %v988_v10 = vld [vmem:[%s1294_s8 + $0x10] sm:$0xff]   ;;  %v991_v13 = vld [vmem:[%s1294_s8 + $0x48] sm:$0xff]   ;;  %v995_v17 = vld [vmem:[%s1294_s8 + $0x40] sm:$0xff]  }
  0x31   :  { %v989_v11 = vld [vmem:[%s1295_s9 + $0x50] sm:$0xff]   ;;  %v992_v14 = vld [vmem:[%s1294_s8 + $0x8] sm:$0xff]   ;;  %v996_v18 = vld [vmem:[%s1294_s8] sm:$0xff]  }
  0x32   :  { %v990_v12 = vld [vmem:[%s1295_s9 + $0x10] sm:$0xff]   ;;  %v993_v15 = vld [vmem:[%s1295_s9 + $0x48] sm:$0xff]  }
  0x33   :  { %856 = vmatpush3.bf16.msra.mxu0 %v978_v50  ;;  %v994_v16 = vld [vmem:[%s1295_s9 + $0x8] sm:$0xff]  }
  0x34   :  { %857 = vmatprep.subr.bf16.mxu0 %v981_v51  ;;  %v836_v51 = vld [vmem:[%s1296_s10] ss:$0 sm:$0xff] }
  0x37   :  { %858 = vmatpush3.bf16.msra.mxu0 %v982_v52 }
  0x38   :  { %859 = vmatprep.subr.bf16.mxu0 %v985_v53 }
  0x3b   :  { %860 = vmatpush3.bf16.msra.mxu0 %v986_v54 }
  0x3c   :  { %861 = vmatprep.subr.bf16.mxu0 %v989_v11 }
  0x3f   :  { %862 = vmatpush3.bf16.msra.mxu0 %v990_v12 }
  0x40   :  { %863 = vmatprep.subr.bf16.mxu0 %v993_v15 }
  0x43   :  { %864 = vmatpush3.bf16.msra.mxu0 %v994_v16 }
  0xe1   :  { %v153_v20 = vpop.f32.mrf.mxu0 }
  0xe2   :  { %v154_v21 = vadd.f32 %v773_v19, %v153_v20  ;;  %v997_v19 = vld [vmem:[%s1295_s9 + $0x40] sm:$0xff]  }
  0xe3   :  { %v913_v22 = vpop.f32.mrf.mxu0  ;;  %v998_v20 = vld [vmem:[%s1295_s9] sm:$0xff]   ;;  %865 = vmatprep.subr.bf16.mxu0 %v997_v19  ;;  %s1024_s9 = smov [#allocation2]  }
  0xe4   :  { %vm159_vm2 = vcmp.gt.f32.partialorder %v154_v21, 0.0  ;;  %v160_v23 = vmul.f32 0.2, %v154_v21  ;;  %866 = vmatpush3.bf16.msra.mxu0 %v998_v20  ;;  %s765_s2 = sshll.u32 %s1024_s9, 4  ;;  %s766_s2 = int_to_ptr.vmem [resolvable:$true] %s765_s2 }
  0xe5   :  { %v156_v24 = vpop.f32.mrf.mxu0  ;;  %s999_s25 = scalar_lea.vmem %s766_s2, 32  ;;  %p1004_p1 = scmp.lt.s32.totalorder %s766_s2, %s766_s2 }
  0xe6   :  { %v161_v25 = vsel %vm159_vm2, %v154_v21, %v160_v23  ;;  %v268_v21 = vlaneseq  ;;  %v266_v24 = vld [vmem:[%s1293_s7] sm:$0x3]  ;;  %p1000_p0 = scmp.ne.s32.totalorder %s766_s2, %s999_s25  ;;  %p1005_p2 = scmp.lt.s32.totalorder %s999_s25, %s999_s25 }
  0xe7   :  { %v162_v27 = vpack.c.bf16 %v161_v25, %v161_v25  ;;  %v914_v28 = vpop.f32.mrf.mxu0 }
  0xe8   :  { %v269_v22 = vshrl.u32 %v268_v21, 7  ;;  %p1006_p3 = por %p1005_p2, %p1004_p1 }
  0xe9   :  { %924 = vmatmul.mubr.msk.bf16.vlgmr.msra.gmra.mxu1 %vm202_vm3, %v162_v27 }
  0xea   :  { %359 = vmatpush1.bf16.msra.mxu1 %v943_v26  ;;  %390 = vmatprep.mubr.bf16.mxu1 %v1023_v43  ;;  %v270_v23 = vsub.s32 0, %v269_v22  ;;  %v274_v25 = vsub.s32 1, %v269_v22  ;;  %p1007_p4 = pnand %p1006_p3, %p1000_p0 }
  0xeb   :  { %360 = vmatprep.subr.bf16.mxu1 %v948_v29 }
  0xec   :  { %v271_v26 = vrot.slane %v266_v24, %v270_v23  ;;  %v275_v27 = vrot.slane %v266_v24, %v274_v25 }
  0xee   :  { %361 = vmatpush1.bf16.msra.mxu1 %v946_v30 }
  0xef   :  { %362 = vmatprep.subr.bf16.mxu1 %v951_v31 }
  0xf2   :  { %363 = vmatpush1.bf16.msra.mxu1 %v949_v32 }
  0xf3   :  { %364 = vmatprep.subr.bf16.mxu1 %v954_v33 }
  0xf6   :  { %365 = vmatpush1.bf16.msra.mxu1 %v952_v34 }
  0xf7   :  { %366 = vmatprep.subr.bf16.mxu1 %v957_v35 }
  0xfa   :  { %367 = vmatpush1.bf16.msra.mxu1 %v955_v36 }
  0xfb   :  { %368 = vmatprep.subr.bf16.mxu1 %v960_v37 }
  0xfe   :  { %369 = vmatpush1.bf16.msra.mxu1 %v958_v38 }
  0xff   :  { %370 = vmatprep.subr.bf16.mxu1 %v963_v39 }
 0x102   :  { %371 = vmatpush1.bf16.msra.mxu1 %v961_v40 }
 0x103   :  { %372 = vmatprep.subr.bf16.mxu1 %v966_v41 }
 0x106   :  { %373 = vmatpush1.bf16.msra.mxu1 %v964_v42 }
 0x107   :  { %873 = vmatprep.subr.bf16.mxu1 %v967_v44 }
 0x1a9   :  { %v240_v56 = vpop.f32.mrf.mxu1 }
 0x1aa   :  { %v241_v57 = vadd.f32 %v782_v55, %v240_v56 }
 0x1ab   :  { %v925_v58 = vpop.f32.mrf.mxu1 }
 0x1ac   :  { %vm246_vm4 = vcmp.gt.f32.partialorder %v241_v57, 0.0  ;;  %v247_v59 = vmul.f32 0.2, %v241_v57 }
 0x1ad   :  { %v243_v60 = vpop.f32.mrf.mxu1 }
 0x1ae   :  { %v248_v61 = vsel %vm246_vm4, %v241_v57, %v247_v59 }
 0x1af   :  { %v249_v63 = vpack.c.bf16 %v248_v61, %v248_v61  ;;  %v926_v0 = vpop.f32.mrf.mxu1 }
 0x1b1   :  { %391 = vmatmul.mubr.bf16.vlgmr.msra.gmra.mxu1 %v249_v63 }
 0x1b2   :  { %874 = vmatpush3.bf16.msra.mxu1 %v968_v62 }
 0x1b3   :  { %875 = vmatprep.subr.bf16.mxu1 %v971_v1 }
 0x1b6   :  { %876 = vmatpush3.bf16.msra.mxu1 %v972_v2 }
 0x1b7   :  { %877 = vmatprep.subr.bf16.mxu1 %v975_v3 }
 0x1ba   :  { %878 = vmatpush3.bf16.msra.mxu1 %v976_v4 }
 0x1bb   :  { %879 = vmatprep.subr.bf16.mxu1 %v979_v5 }
 0x1be   :  { %880 = vmatpush3.bf16.msra.mxu1 %v980_v6 }
 0x1bf   :  { %881 = vmatprep.subr.bf16.mxu1 %v983_v7 }
 0x1c2   :  { %882 = vmatpush3.bf16.msra.mxu1 %v984_v8 }
 0x1c3   :  { %883 = vmatprep.subr.bf16.mxu1 %v987_v9 }
 0x1c6   :  { %884 = vmatpush3.bf16.msra.mxu1 %v988_v10 }
 0x1c7   :  { %885 = vmatprep.subr.bf16.mxu1 %v991_v13 }
 0x1ca   :  { %886 = vmatpush3.bf16.msra.mxu1 %v992_v14 }
 0x1cb   :  { %887 = vmatprep.subr.bf16.mxu1 %v995_v17 }
 0x1ce   :  { %888 = vmatpush3.bf16.msra.mxu1 %v996_v18 }
 0x271   :  { %v392_v28 = vpop.f32.mrf.mxu1 }
 0x272   :  { %v393_v29 = vadd.f32 %v392_v28, %v271_v26 }
 0x273   :  { %v394_v30 = vpop.f32.mrf.mxu1 }
 0x274   :  { %vm399_vm5 = vcmp.gt.f32.partialorder %v393_v29, 0.0  ;;  %v401_v31 = vmul.f32 0.2, %v393_v29  ;;  %v395_v32 = vadd.f32 %v394_v30, %v275_v27 }
 0x275   :  { %v396_v33 = vpop.f32.mrf.mxu1 }
 0x276   :  { %v403_v34 = vsel %vm399_vm5, %v393_v29, %v401_v31  ;;  %vm400_vm6 = vcmp.gt.f32.partialorder %v395_v32, 0.0  ;;  %v402_v35 = vmul.f32 0.2, %v395_v32 }
 0x277   :  { %v397_v36 = vpop.f32.mrf.mxu1  ;;  %v405_v37 = vpack.c.bf16 %v403_v34, %v403_v34 }
 0x278   :  { %v404_v38 = vsel %vm400_vm6, %v395_v32, %v402_v35 }
 0x279   :  { %v406_v39 = vpack.c.bf16 %v404_v38, %v404_v38  ;;  %v473_v41 = vrot.slane %v405_v37, 1 }
 0x27b   :  { %741 = vmatprep.mubr.bf16.mxu1 %v406_v39  ;;  %v474_v40 = vrot.slane %v406_v39, 1 }
 0x27c   :  { %742 = vmatmul.mubr.bf16.vlgmr.msra.gmra.mxu1 %v405_v37 }
 0x27d   :  { %605 = vmatprep.mubr.bf16.mxu0 %v474_v40 }
 0x27e   :  { %606 = vmatmul.mubr.bf16.vlgmr.msra.gmra.mxu0 %v473_v41 }
 0x33c   :  { %v889_v42 = vpop.f32.mrf.mxu1 }
 0x33e   :  { %v867_v43 = vpop.f32.mrf.mxu0  ;;  %v890_v44 = vpop.f32.mrf.mxu1 }
 0x33f   :  { %v891_v47 = vadd.f32 %v890_v44, %v889_v42 }
 0x340   :  { %v868_v45 = vpop.f32.mrf.mxu0  ;;  %v892_v46 = vpop.f32.mrf.mxu1 }
 0x341   :  { %v869_v48 = vadd.f32 %v868_v45, %v867_v43 }
 0x342   :  { %v870_v49 = vpop.f32.mrf.mxu0  ;;  %v893_v50 = vpop.f32.mrf.mxu1 }
 0x343   :  { %v744_v52 = vadd.f32 %v891_v47, %v869_v48 }
 0x344   :  { %v871_v53 = vpop.f32.mrf.mxu0 }
 0x345   :  { %v756_v54 = vadd.f32 %v836_v51, %v744_v52 }
 0x347   :  { %758 = vst.msk [vmem:[#allocation2] sm:$0x3] %vm757_vm7, %v756_v54 }
 0x348   :  { %1010 = shalt.err (!%p1007_p4)
}
 0x349   :  { %768 = dma.vmem_to_hbm [thread:$0]  %s766_s2, 32, %s1297_s11, [#allocation3]  }
 0x34a   :  { %1019 = dma.done.wait [#allocation3], 32  }
 0x34b   :  { %1020 = vsyncadd [#allocation3], 4294967264 }
 0x34c   :  { %772 = vsyncpa [#allocation3], 1 }

</bundles_post_ra>
